<compile_context>
chip_gen: v6e
topology: v6e:2x2x1
jax: 0.10.0
libtpu: 0.0.40
codegen_flags: <defaults>
</compile_context>

<pallas_src>
import functools

import jax
import jax.numpy as jnp
from jax.experimental import pallas as pl
from jax.experimental.pallas import tpu as pltpu

ROW_TILE_MAX = 512  # max rows of x processed per grid step (multiple of 16)

_NONLIN = {
    "tanh": jnp.tanh,
    "relu": lambda v: jnp.maximum(v, 0.0),
    "sigmoid": jax.nn.sigmoid,
    "identity": lambda v: v,
}

_HAS_BUFFERED = hasattr(pl, "Buffered")


def _round_up(a: int, m: int) -> int:
    return (a + m - 1) // m * m


def _vmem_capacity_bytes() -> int:
    try:
        return int(pltpu.get_tpu_info().vmem_capacity_bytes)
    except Exception:
        return 64 << 20  # conservative (v7x per-TensorCore)


# --------------------------------------------------------------------------- #
# Kernels
# --------------------------------------------------------------------------- #
def _mlp_kernel_resident(x_ref, w1_ref, b1_ref, w2_ref, b2_ref, out_ref, *, nonlin):
    # Layer 1: (T, Fp)bf16 @ (Fp, Hp)bf16 -> f32 acc on the MXU.
    h = jnp.dot(x_ref[...], w1_ref[...], preferred_element_type=jnp.float32)
    # bias + ReLU (VPU); cast to bf16 here so the live intermediate feeding the
    # second matmul is half-size (VMEM/vreg pressure).
    h = jnp.maximum(h + b1_ref[...], 0.0).astype(jnp.bfloat16)
    # Layer 2: (T, Hp)bf16 @ (Hp, Op)bf16 -> f32 acc on the MXU.
    s = jnp.dot(h, w2_ref[...], preferred_element_type=jnp.float32) + b2_ref[...]
    # Output nonlinearity (tanh/sigmoid -> EUP slot; relu/identity -> VPU).
    out_ref[...] = _NONLIN[nonlin](s)


def _mlp_kernel_htiled(x_ref, w1_ref, b1_ref, w2_ref, b2_ref, out_ref, acc_ref, *,
                       nonlin):
    # Grid = (row_tiles, hidden_tiles); hidden axis is an "arbitrary" reduction.
    k = pl.program_id(1)

    @pl.when(k == 0)
    def _():
        acc_ref[...] = jnp.zeros_like(acc_ref)

    h = jnp.dot(x_ref[...], w1_ref[...], preferred_element_type=jnp.float32)
    h = jnp.maximum(h + b1_ref[...], 0.0).astype(jnp.bfloat16)
    acc_ref[...] += jnp.dot(h, w2_ref[...], preferred_element_type=jnp.float32)

    @pl.when(k == pl.num_programs(1) - 1)
    def _():
        out_ref[...] = _NONLIN[nonlin](acc_ref[...] + b2_ref[...])


# --------------------------------------------------------------------------- #
# Parameter prep (do once, not per forward)
# --------------------------------------------------------------------------- #
def prepare_mlp_params(w1, b1, w2, b2):
    """Pad to lane-dense (multiples of 128) shapes and cast weights to bf16.

    w1: (in_features, hidden)  (= fc1.weight.T),  b1: (hidden,)
    w2: (hidden, out_features) (= fc2.weight.T),  b2: (out_features,)
    """
    in_features, hidden = w1.shape
    hidden2, out_features = w2.shape
    assert hidden2 == hidden
    f_pad = _round_up(in_features, 128)
    h_pad = _round_up(hidden, 128)
    o_pad = _round_up(out_features, 128)

    w1_p = jnp.pad(w1.astype(jnp.bfloat16),
                   ((0, f_pad - in_features), (0, h_pad - hidden)))
    b1_p = jnp.pad(b1.astype(jnp.float32), (0, h_pad - hidden)).reshape(1, h_pad)
    w2_p = jnp.pad(w2.astype(jnp.bfloat16),
                   ((0, h_pad - hidden), (0, o_pad - out_features)))
    b2_p = jnp.pad(b2.astype(jnp.float32), (0, o_pad - out_features)).reshape(1, o_pad)

    return dict(w1=w1_p, b1=b1_p, w2=w2_p, b2=b2_p,
                in_features=in_features, hidden=hidden, out_features=out_features)


# --------------------------------------------------------------------------- #
# Forward
# --------------------------------------------------------------------------- #
def mlp_forward(x, params, output_nonlinearity="tanh", *, force_htiled=False):
    """Pallas MLP forward. x: (..., in_features) -> (..., out_features) f32."""
    in_features = params["in_features"]
    out_features = params["out_features"]
    w1_p, b1_p, w2_p, b2_p = params["w1"], params["b1"], params["w2"], params["b2"]
    f_pad, h_pad = w1_p.shape
    o_pad = w2_p.shape[1]
    assert x.shape[-1] == in_features

    lead_shape = x.shape[:-1]
    x_flat = x.reshape(-1, in_features)
    n_rows = x_flat.shape[0]

    # ---- row tile: minimise padding, keep >=4 grid steps when rows allow ----
    n_tiles = max(pl.cdiv(n_rows, ROW_TILE_MAX), min(4, pl.cdiv(n_rows, 256)))
    row_tile = min(ROW_TILE_MAX, _round_up(max(pl.cdiv(n_rows, n_tiles), 1), 16))

    # ---- VMEM budget / path selection ---------------------------------------
    vmem_cap = _vmem_capacity_bytes()
    budget = int(vmem_cap * 0.75)
    margin = 4 << 20

    def resident_vmem(rt, wbuf):
        return (2 * rt * f_pad * 2                       # x slab (bf16), dbl-buffered
                + 2 * rt * o_pad * 4                     # out slab (f32), dbl-buffered
                + wbuf * (f_pad * h_pad + h_pad * o_pad) * 2   # bf16 weights
                + wbuf * 8 * (h_pad + o_pad) * 4         # biases (sublane-padded)
                + rt * h_pad * 6                         # hidden working set f32+bf16
                + margin)

    def htiled_vmem(rt, ht):
        return (2 * rt * f_pad * 2
                + 2 * rt * o_pad * 4
                + 2 * (f_pad * ht + ht * o_pad) * 2      # streamed weight tiles
                + 2 * 8 * ht * 4 + 8 * o_pad * 4         # biases
                + rt * o_pad * 4                         # f32 accumulator scratch
                + rt * ht * 6                            # hidden working set
                + margin)

    wbuf = 2
    if resident_vmem(row_tile, 2) > budget and _HAS_BUFFERED:
        wbuf = 1                               # single-buffer resident weights (v7x)
    while resident_vmem(row_tile, wbuf) > budget and row_tile > 128:
        row_tile = max(128, _round_up(row_tile // 2, 16))
    use_resident = (resident_vmem(row_tile, wbuf) <= budget) and not force_htiled

    n_row_tiles = pl.cdiv(n_rows, row_tile)
    n_rows_pad = n_row_tiles * row_tile

    # ---- x: fused pad + bf16 cast (skip pad materialisation when aligned) ---
    x_bf = x_flat.astype(jnp.bfloat16)
    if (n_rows_pad != n_rows) or (f_pad != in_features):
        x_p = jnp.pad(x_bf, ((0, n_rows_pad - n_rows), (0, f_pad - in_features)))
    else:
        x_p = x_bf

    cost = pl.CostEstimate(
        flops=2 * n_rows_pad * (f_pad * h_pad + h_pad * o_pad),
        transcendentals=(n_rows_pad * o_pad
                         if output_nonlinearity in ("tanh", "sigmoid") else 0),
        bytes_accessed=(n_rows_pad * f_pad * 2 + n_rows_pad * o_pad * 4
                        + (f_pad * h_pad + h_pad * o_pad) * 2),
    )

    if use_resident:
        def _resident_spec(shape, single_buffer):
            idx = lambda i: (0, 0)
            if single_buffer and _HAS_BUFFERED:
                try:
                    return pl.BlockSpec(shape, idx, pipeline_mode=pl.Buffered(1))
                except TypeError:
                    pass
            return pl.BlockSpec(shape, idx)

        footprint = resident_vmem(row_tile, wbuf)
        vmem_limit = int(min(max(footprint, 32 << 20), 0.9 * vmem_cap))
        out_pad = pl.pallas_call(
            functools.partial(_mlp_kernel_resident, nonlin=output_nonlinearity),
            out_shape=jax.ShapeDtypeStruct((n_rows_pad, o_pad), jnp.float32),
            grid_spec=pltpu.PrefetchScalarGridSpec(
                num_scalar_prefetch=0,
                grid=(n_row_tiles,),
                in_specs=[
                    pl.BlockSpec((row_tile, f_pad), lambda i: (i, 0)),  # x (streamed)
                    _resident_spec((f_pad, h_pad), wbuf == 1),          # W1 (resident)
                    _resident_spec((1, h_pad), wbuf == 1),              # b1
                    _resident_spec((h_pad, o_pad), wbuf == 1),          # W2
                    _resident_spec((1, o_pad), wbuf == 1),              # b2
                ],
                out_specs=pl.BlockSpec((row_tile, o_pad), lambda i: (i, 0)),
            ),
            compiler_params=pltpu.CompilerParams(
                dimension_semantics=("parallel",),
                vmem_limit_bytes=vmem_limit,
            ),
            cost_estimate=cost,
        )(x_p, w1_p, b1_p, w2_p, b2_p)
    else:
        # Hidden-dim-tiled fallback: stream W1 column tiles / W2 row tiles,
        # accumulate the second matmul over hidden tiles in an f32 scratch.
        h_tile = 128
        for cand in (2048, 1024, 512, 256, 128):
            if h_pad % cand == 0 and htiled_vmem(row_tile, cand) <= budget:
                h_tile = cand
                break
        n_h_tiles = h_pad // h_tile
        footprint = htiled_vmem(row_tile, h_tile)
        vmem_limit = int(min(max(footprint, 32 << 20), 0.9 * vmem_cap))
        out_pad = pl.pallas_call(
            functools.partial(_mlp_kernel_htiled, nonlin=output_nonlinearity),
            out_shape=jax.ShapeDtypeStruct((n_rows_pad, o_pad), jnp.float32),
            grid_spec=pltpu.PrefetchScalarGridSpec(
                num_scalar_prefetch=0,
                grid=(n_row_tiles, n_h_tiles),
                in_specs=[
                    pl.BlockSpec((row_tile, f_pad), lambda i, k: (i, 0)),  # x
                    pl.BlockSpec((f_pad, h_tile), lambda i, k: (0, k)),    # W1 tile
                    pl.BlockSpec((1, h_tile), lambda i, k: (0, k)),        # b1 tile
                    pl.BlockSpec((h_tile, o_pad), lambda i, k: (k, 0)),    # W2 tile
                    pl.BlockSpec((1, o_pad), lambda i, k: (0, 0)),         # b2
                ],
                out_specs=pl.BlockSpec((row_tile, o_pad), lambda i, k: (i, 0)),
                scratch_shapes=[pltpu.VMEM((row_tile, o_pad), jnp.float32)],
            ),
            compiler_params=pltpu.CompilerParams(
                dimension_semantics=("parallel", "arbitrary"),
                vmem_limit_bytes=vmem_limit,
            ),
            cost_estimate=cost,
        )(x_p, w1_p, b1_p, w2_p, b2_p)

    if n_rows_pad != n_rows or o_pad != out_features:
        out_pad = out_pad[:n_rows, :out_features]
    return out_pad.reshape(*lead_shape, out_features)


def mlp_forward_raw(x, w1, b1, w2, b2, output_nonlinearity="tanh"):
    """Convenience wrapper; prefer prepare_mlp_params() once + mlp_forward()."""
    return mlp_forward(x, prepare_mlp_params(w1, b1, w2, b2), output_nonlinearity)


# --------------------------------------------------------------------------- #
# Reference + self-test
# --------------------------------------------------------------------------- #
def _reference(x, w1, b1, w2, b2, output_nonlinearity):
    xf = x.reshape(-1, x.shape[-1]).astype(jnp.float32)
    h = jnp.maximum(xf @ w1 + b1, 0.0)
    s = h @ w2 + b2
    y = _NONLIN[output_nonlinearity](s)
    return y.reshape(*x.shape[:-1], w2.shape[1])


if __name__ == "__main__":
    key = jax.random.PRNGKey(0)
    k_x, k_w1, k_b1, k_w2, k_b2, k_w1b, k_w2b = jax.random.split(key, 7)

    # Small shapes; deliberately non-multiples of 8/128 to exercise padding.
    B, S = 2, 16
    IN_FEATURES, HIDDEN, OUT_FEATURES = 300, 96, 24

    x = jax.random.normal(k_x, (B, S, IN_FEATURES), dtype=jnp.float32)
    w1 = jax.random.normal(k_w1, (IN_FEATURES, HIDDEN), dtype=jnp.float32) * 0.05
    b1 = jax.random.normal(k_b1, (HIDDEN,), dtype=jnp.float32) * 0.01
    w2 = jax.random.normal(k_w2, (HIDDEN, OUT_FEATURES), dtype=jnp.float32) * 0.1
    b2 = jax.random.normal(k_b2, (OUT_FEATURES,), dtype=jnp.float32) * 0.01

    # ---- check 1: resident-weight path (default) ----------------------------
    params = prepare_mlp_params(w1, b1, w2, b2)
    y = jax.block_until_ready(mlp_forward(x, params, "tanh"))
    ref = _reference(x, w1, b1, w2, b2, "tanh")
    assert y.shape == (B, S, OUT_FEATURES)
    # bf16-fed MXU with f32 accumulation vs f32 reference.
    err1 = float(jnp.max(jnp.abs(y - ref)))
    assert err1 < 2e-2, f"resident path: max abs error {err1}"

    # ---- check 2: hidden-tiled fallback path (forced, multi h-tiles) --------
    HIDDEN2 = 320  # pads to 384 -> 3 hidden tiles of 128
    w1b = jax.random.normal(k_w1b, (IN_FEATURES, HIDDEN2), dtype=jnp.float32) * 0.05
    b1b = jnp.zeros((HIDDEN2,), jnp.float32) + 0.01
    w2b = jax.random.normal(k_w2b, (HIDDEN2, OUT_FEATURES), dtype=jnp.float32) * 0.1
    b2b = jnp.zeros((OUT_FEATURES,), jnp.float32) - 0.01
    params_b = prepare_mlp_params(w1b, b1b, w2b, b2b)
    y2 = jax.block_until_ready(mlp_forward(x, params_b, "sigmoid", force_htiled=True))
    ref2 = _reference(x, w1b, b1b, w2b, b2b, "sigmoid")
    err2 = float(jnp.max(jnp.abs(y2 - ref2)))
    assert y2.shape == (B, S, OUT_FEATURES)
    assert err2 < 2e-2, f"h-tiled path: max abs error {err2}"

    print("KERNEL_OK")
</pallas_src>

<mosaic_0001>
module attributes {stable_mosaic.version = 11 : i64} {
  func.func @_mlp_kernel_resident(%arg0: i32, %arg1: memref<32x384xbf16, #tpu.memory_space<vmem>>, %arg2: memref<384x128xbf16, #tpu.memory_space<vmem>>, %arg3: memref<1x128xf32, #tpu.memory_space<vmem>>, %arg4: memref<128x128xbf16, #tpu.memory_space<vmem>>, %arg5: memref<1x128xf32, #tpu.memory_space<vmem>>, %arg6: memref<32x128xf32, #tpu.memory_space<vmem>>) attributes {dimension_semantics = [#tpu.dimension_semantics<parallel>], iteration_bounds = array<i64: 1>, scalar_prefetch = 0 : i64, scratch_operands = 0 : i64, tpu.core_type = #tpu.core_type<tc>, window_params = [{transform_indices = @transform_0, window_bounds = array<i64: 32, 384>}, {pipeline_mode = #tpu.pipeline_mode<synchronous>, transform_indices = @transform_1, window_bounds = array<i64: 384, 128>}, {pipeline_mode = #tpu.pipeline_mode<synchronous>, transform_indices = @transform_2, window_bounds = array<i64: 1, 128>}, {pipeline_mode = #tpu.pipeline_mode<synchronous>, transform_indices = @transform_3, window_bounds = array<i64: 128, 128>}, {pipeline_mode = #tpu.pipeline_mode<synchronous>, transform_indices = @transform_4, window_bounds = array<i64: 1, 128>}, {transform_indices = @transform_5, window_bounds = array<i64: 32, 128>}]} {
    %c0 = arith.constant 0 : index
    %c0_0 = arith.constant 0 : index
    %0 = vector.load %arg1[%c0, %c0_0] : memref<32x384xbf16, #tpu.memory_space<vmem>>, vector<32x384xbf16>
    %c0_1 = arith.constant 0 : index
    %c0_2 = arith.constant 0 : index
    %1 = vector.load %arg2[%c0_1, %c0_2] : memref<384x128xbf16, #tpu.memory_space<vmem>>, vector<384x128xbf16>
    %cst = arith.constant dense<0.000000e+00> : vector<32x128xf32>
    %2 = tpu.matmul %0, %1, %cst {dimension_numbers = #tpu.dot_dimension_numbers<[1], [0], [0], [1], [0, 0, 1, 1], [], []>} : vector<32x384xbf16>, vector<384x128xbf16>, vector<32x128xf32> -> vector<32x128xf32>
    %c0_3 = arith.constant 0 : index
    %c0_4 = arith.constant 0 : index
    %3 = vector.load %arg3[%c0_3, %c0_4] : memref<1x128xf32, #tpu.memory_space<vmem>>, vector<1x128xf32>
    %4 = vector.broadcast %3 : vector<1x128xf32> to vector<32x128xf32>
    %5 = arith.addf %2, %4 : vector<32x128xf32>
    %cst_5 = arith.constant 0.000000e+00 : f32
    %6 = vector.broadcast %cst_5 : f32 to vector<32x128xf32>
    %7 = arith.maximumf %5, %6 : vector<32x128xf32>
    %8 = arith.truncf %7 : vector<32x128xf32> to vector<32x128xbf16>
    %c0_6 = arith.constant 0 : index
    %c0_7 = arith.constant 0 : index
    %9 = vector.load %arg4[%c0_6, %c0_7] : memref<128x128xbf16, #tpu.memory_space<vmem>>, vector<128x128xbf16>
    %cst_8 = arith.constant dense<0.000000e+00> : vector<32x128xf32>
    %10 = tpu.matmul %8, %9, %cst_8 {dimension_numbers = #tpu.dot_dimension_numbers<[1], [0], [0], [1], [0, 0, 1, 1], [], []>} : vector<32x128xbf16>, vector<128x128xbf16>, vector<32x128xf32> -> vector<32x128xf32>
    %c0_9 = arith.constant 0 : index
    %c0_10 = arith.constant 0 : index
    %11 = vector.load %arg5[%c0_9, %c0_10] : memref<1x128xf32, #tpu.memory_space<vmem>>, vector<1x128xf32>
    %12 = vector.broadcast %11 : vector<1x128xf32> to vector<32x128xf32>
    %13 = arith.addf %10, %12 : vector<32x128xf32>
    %14 = math.tanh %13 : vector<32x128xf32>
    %c0_11 = arith.constant 0 : index
    %c0_12 = arith.constant 0 : index
    %15 = vector.load %arg6[%c0_11, %c0_12] : memref<32x128xf32, #tpu.memory_space<vmem>>, vector<32x128xf32>
    tpu.vector_store %arg6[%c0_11, %c0_12], %14 {strides = array<i32>} : memref<32x128xf32, #tpu.memory_space<vmem>>, vector<32x128xf32>,
    return
  }
  func.func @transform_0(%arg0: i32) -> (i32, i32) {
    %c0_i32 = arith.constant 0 : i32
    %c0_i32_0 = arith.constant 0 : i32
    return %arg0, %c0_i32 : i32, i32
  }
  func.func @transform_1(%arg0: i32) -> (i32, i32) {
    %c0_i32 = arith.constant 0 : i32
    %c0_i32_0 = arith.constant 0 : i32
    %c0_i32_1 = arith.constant 0 : i32
    return %c0_i32, %c0_i32_0 : i32, i32
  }
  func.func @transform_2(%arg0: i32) -> (i32, i32) {
    %c0_i32 = arith.constant 0 : i32
    %c0_i32_0 = arith.constant 0 : i32
    %c0_i32_1 = arith.constant 0 : i32
    return %c0_i32, %c0_i32_0 : i32, i32
  }
  func.func @transform_3(%arg0: i32) -> (i32, i32) {
    %c0_i32 = arith.constant 0 : i32
    %c0_i32_0 = arith.constant 0 : i32
    %c0_i32_1 = arith.constant 0 : i32
    return %c0_i32, %c0_i32_0 : i32, i32
  }
  func.func @transform_4(%arg0: i32) -> (i32, i32) {
    %c0_i32 = arith.constant 0 : i32
    %c0_i32_0 = arith.constant 0 : i32
    %c0_i32_1 = arith.constant 0 : i32
    return %c0_i32, %c0_i32_0 : i32, i32
  }
  func.func @transform_5(%arg0: i32) -> (i32, i32) {
    %c0_i32 = arith.constant 0 : i32
    %c0_i32_0 = arith.constant 0 : i32
    return %arg0, %c0_i32 : i32, i32
  }
}

</mosaic_0001>

<bundles_post_ra>
// kernel: tpu_custom_call.1
= control target key start
LH: loop header
LB: loop body
LE: loop exit
PB: predicated region body
PF: predicated region fallthrough
CT: control target
= control target key end

     0   :  { %10 = vsyncpa [#allocation3], 0  ;;  %s882_s0 = inlined_call_operand.hbm [shape: bf16[32,384], index: 0, kind: input, shape index: {}]   ;;  %s883_s1 = inlined_call_operand.hbm [shape: bf16[384,128], index: 1, kind: input, shape index: {}]   ;;  %s884_s2 = inlined_call_operand.vmem [shape: f32[1,128], index: 2, kind: input, shape index: {}]   ;;  %s885_s3 = inlined_call_operand.hbm [shape: bf16[128,128], index: 3, kind: input, shape index: {}]   ;;  %s886_s4 = inlined_call_operand.vmem [shape: f32[1,128], index: 4, kind: input, shape index: {}]   ;;  %s887_s5 = inlined_call_operand.hbm [shape: f32[32,128], index: 5, kind: output, shape index: {}]  }
   0x1   :  { %11 = vsyncpa [#allocation6], 0 }
   0x2   :  { %12 = vsyncpa [#allocation4], 0  ;;  %s824_s18 = smov [#allocation5]  }
   0x3   :  { %s30_s19 = sshll.u32 %s824_s18, 4  ;;  %s31_s19 = int_to_ptr.vmem [resolvable:$true] %s30_s19 }
   0x4   :  { %s746_s20 = scalar_lea.vmem %s31_s19, 3072  ;;  %p751_p1 = scmp.lt.s32.totalorder %s31_s19, %s31_s19 }
   0x5   :  { %p747_p0 = scmp.ne.s32.totalorder %s31_s19, %s746_s20  ;;  %p752_p2 = scmp.lt.s32.totalorder %s746_s20, %s746_s20 }
   0x7   :  { %p753_p3 = por %p752_p2, %p751_p1 }
   0x9   :  { %p754_p4 = pnand %p753_p3, %p747_p0 }
   0xb   :  { %757 = shalt.err (!%p754_p4)
}
   0xc   :  { %s825_s21 = smov 64   ;;  %s826_s22 = smov 4  }
   0xd   :  { %36 = dma.hbm_to_vmem [thread:$0]  %s883_s1, 3072, %s31_s19, [#allocation6], %s825_s21, %s825_s21, %s826_s22  }
   0xe   :  { %s827_s25 = smov [#allocation2]  }
   0xf   :  { %s18_s26 = sshll.u32 %s827_s25, 4  ;;  %s19_s26 = int_to_ptr.vmem [resolvable:$true] %s18_s26 }
  0x10   :  { %s766_s27 = scalar_lea.vmem %s19_s26, 768  ;;  %p771_p6 = scmp.lt.s32.totalorder %s19_s26, %s19_s26 }
  0x11   :  { %p767_p5 = scmp.ne.s32.totalorder %s19_s26, %s766_s27  ;;  %p772_p7 = scmp.lt.s32.totalorder %s766_s27, %s766_s27 }
  0x13   :  { %p773_p8 = por %p772_p7, %p771_p6 }
  0x15   :  { %p774_p9 = pnand %p773_p8, %p767_p5 }
  0x17   :  { %777 = shalt.err (!%p774_p9)
}
  0x18   :  { %s828_s28 = smov 192   ;;  %s829_s29 = smov 12  }
  0x19   :  { %24 = dma.hbm_to_vmem [thread:$0]  %s882_s0, 768, %s19_s26, [#allocation3], %s828_s28, %s828_s28, %s829_s29  }
  0x1a   :  { %s830_s7 = smov [#allocation7]  }
  0x1b   :  { %s44_s8 = sshll.u32 %s830_s7, 4  ;;  %s45_s8 = int_to_ptr.vmem [resolvable:$true] %s44_s8 }
  0x1c   :  { %s786_s1 = scalar_lea.vmem %s45_s8, 1024  ;;  %p791_p11 = scmp.lt.s32.totalorder %s45_s8, %s45_s8 }
  0x1d   :  { %p787_p10 = scmp.ne.s32.totalorder %s45_s8, %s786_s1  ;;  %p792_p12 = scmp.lt.s32.totalorder %s786_s1, %s786_s1 }
  0x1f   :  { %p793_p13 = por %p792_p12, %p791_p11 }
  0x21   :  { %p794_p0 = pnand %p793_p13, %p787_p10 }
  0x23   :  { %797 = shalt.err (!%p794_p0)
}
  0x24   :  { %50 = dma.hbm_to_vmem [thread:$0]  %s885_s3, 1024, %s45_s8, [#allocation6], %s825_s21, %s825_s21, %s826_s22  }
  0x25   :  { %818 = dma.done.wait [#allocation3], 768  }
  0x26   :  { %819 = vsyncadd [#allocation3], 4294966528 }
  0x27   :  { %820 = dma.done.wait [#allocation6], 4096  }
  0x28   :  { %821 = vsyncadd [#allocation6], 4294963200  ;;  %v690_v0 = vld [vmem:[#allocation5 + $0x78] sm:$0xff]   ;;  %v692_v2 = vld [vmem:[#allocation5 + $0x70] sm:$0xff]   ;;  %s831_s12 = smov [#allocation8]  }
  0x29   :  { %v691_v1 = vld [vmem:[#allocation5 + $0x38] sm:$0xff]   ;;  %592 = vmatprep.subr.bf16.mxu0 %v690_v0  ;;  %v694_v4 = vld [vmem:[#allocation5 + $0x30] sm:$0xff]   ;;  %v695_v5 = vld [vmem:[#allocation5 + $0x68] sm:$0xff]   ;;  %s539_s13 = sshll.u32 %s831_s12, 4  ;;  %s540_s13 = int_to_ptr.vmem [resolvable:$true] %s539_s13 }
  0x2a   :  { %593 = vmatpush3.bf16.msra.mxu0 %v691_v1  ;;  %v693_v3 = vld [vmem:[#allocation5 + $0xb8] sm:$0xff]   ;;  %v696_v6 = vld [vmem:[#allocation5 + $0xb0] sm:$0xff]   ;;  %v697_v7 = vld [vmem:[#allocation5 + $0x28] sm:$0xff]   ;;  %p803_p2 = scmp.lt.s32.totalorder %s540_s13, %s540_s13 }
  0x2b   :  { %594 = vmatprep.subr.bf16.mxu0 %v692_v2  ;;  %640 = vmatprep.subr.bf16.mxu1 %v693_v3  ;;  %v698_v8 = vld [vmem:[#allocation5 + $0x60] sm:$0xff]   ;;  %v699_v9 = vld [vmem:[#allocation5 + $0xa8] sm:$0xff]   ;;  %v701_v11 = vld [vmem:[#allocation5 + $0x58] sm:$0xff]  }
  0x2c   :  { %641 = vmatpush3.bf16.msra.mxu1 %v693_v3  ;;  %v700_v10 = vld [vmem:[#allocation5 + $0x20] sm:$0xff]   ;;  %v703_v13 = vld [vmem:[#allocation5 + $0x18] sm:$0xff]   ;;  %v704_v15 = vld [vmem:[#allocation5 + $0x50] sm:$0xff]  }
  0x2d   :  { %642 = vmatprep.subr.bf16.mxu1 %v696_v6  ;;  %v702_v12 = vld [vmem:[#allocation5 + $0xa0] sm:$0xff]   ;;  %v705_v14 = vld [vmem:[#allocation5 + $0x98] sm:$0xff]   ;;  %v706_v16 = vld [vmem:[#allocation5 + $0x10] sm:$0xff]  }
  0x2e   :  { %595 = vmatpush3.bf16.msra.mxu0 %v694_v4  ;;  %v708_v17 = vld [vmem:[#allocation5 + $0x90] sm:$0xff]   ;;  %v707_v18 = vld [vmem:[#allocation5 + $0x48] sm:$0xff]   ;;  %v710_v20 = vld [vmem:[#allocation5 + $0x40] sm:$0xff]  }
  0x2f   :  { %596 = vmatprep.subr.bf16.mxu0 %v695_v5  ;;  %v709_v19 = vld [vmem:[#allocation5 + $0x8] sm:$0xff]   ;;  %v715_v22 = vld [vmem:[#allocation2 + $0x4] ss:$12 sps:$4 sm:$0xff]   ;;  %v717_v24 = vld [vmem:[#allocation2 + $0x8] ss:$12 sps:$4 sm:$0xff]  }
  0x30   :  { %643 = vmatpush3.bf16.msra.mxu1 %v696_v6  ;;  %v711_v21 = vld [vmem:[#allocation5 + $0x88] sm:$0xff]   ;;  %v712_v23 = vld [vmem:[#allocation5] sm:$0xff]   ;;  %334 = vmatprep.mubr.bf16.mxu0 %v715_v22  ;;  %v713_v26 = vld [vmem:[#allocation2] ss:$12 sps:$4 sm:$0xff]  }
  0x31   :  { %644 = vmatprep.subr.bf16.mxu1 %v699_v9  ;;  %v716_v25 = vld [vmem:[#allocation5 + $0x80] sm:$0xff]   ;;  %656 = vmatprep.mubr.bf16.mxu1 %v717_v24  ;;  %v719_v27 = vld [vmem:[#allocation2 + $0x1c] ss:$12 sps:$4 sm:$0xff]   ;;  %v723_v29 = vld [vmem:[#allocation7 + $0x30] sm:$0xff]  }
  0x32   :  { %597 = vmatpush3.bf16.msra.mxu0 %v697_v7  ;;  %v722_v28 = vld [vmem:[#allocation7 + $0x38] sm:$0xff]   ;;  %v721_v31 = vld [vmem:[#allocation2 + $0x18] ss:$12 sps:$4 sm:$0xff]   ;;  %v725_v33 = vld [vmem:[#allocation7 + $0x20] sm:$0xff]  }
  0x33   :  { %598 = vmatprep.subr.bf16.mxu0 %v698_v8  ;;  %v718_v30 = vld [vmem:[#allocation2 + $0x20] ss:$12 sps:$4 sm:$0xff]   ;;  %v724_v32 = vld [vmem:[#allocation7 + $0x28] sm:$0xff]   ;;  %v729_v37 = vld [vmem:[#allocation7] sm:$0xff]  }
  0x34   :  { %645 = vmatpush3.bf16.msra.mxu1 %v699_v9  ;;  %v726_v34 = vld [vmem:[#allocation7 + $0x18] sm:$0xff]   ;;  %v727_v35 = vld [vmem:[#allocation7 + $0x10] sm:$0xff]   ;;  %v728_v36 = vld [vmem:[#allocation7 + $0x8] sm:$0xff]  }
  0x35   :  { %646 = vmatprep.subr.bf16.mxu1 %v702_v12  ;;  %v552_v40 = vld [vmem:[%s884_s2] ss:$0 sm:$0xff] }
  0x36   :  { %599 = vmatpush3.bf16.msra.mxu0 %v700_v10  ;;  %v583_v5 = vld [vmem:[%s886_s4] ss:$0 sm:$0xff]  ;;  %s798_s4 = scalar_lea.vmem %s540_s13, 512 }
  0x37   :  { %600 = vmatprep.subr.bf16.mxu0 %v701_v11  ;;  %p799_p1 = scmp.ne.s32.totalorder %s540_s13, %s798_s4  ;;  %p804_p3 = scmp.lt.s32.totalorder %s798_s4, %s798_s4 }
  0x38   :  { %647 = vmatpush3.bf16.msra.mxu1 %v702_v12 }
  0x39   :  { %648 = vmatprep.subr.bf16.mxu1 %v705_v14  ;;  %p805_p4 = por %p804_p3, %p803_p2 }
  0x3a   :  { %601 = vmatpush3.bf16.msra.mxu0 %v703_v13 }
  0x3b   :  { %602 = vmatprep.subr.bf16.mxu0 %v704_v15  ;;  %p806_p5 = pnand %p805_p4, %p799_p1 }
  0x3c   :  { %649 = vmatpush3.bf16.msra.mxu1 %v705_v14 }
  0x3d   :  { %650 = vmatprep.subr.bf16.mxu1 %v708_v17 }
  0x3e   :  { %603 = vmatpush3.bf16.msra.mxu0 %v706_v16 }
  0x3f   :  { %604 = vmatprep.subr.bf16.mxu0 %v707_v18 }
  0x40   :  { %651 = vmatpush3.bf16.msra.mxu1 %v708_v17 }
  0x41   :  { %652 = vmatprep.subr.bf16.mxu1 %v711_v21 }
  0x42   :  { %605 = vmatpush3.bf16.msra.mxu0 %v709_v19 }
  0x43   :  { %606 = vmatprep.subr.bf16.mxu0 %v710_v20 }
  0x44   :  { %653 = vmatpush3.bf16.msra.mxu1 %v711_v21 }
  0x45   :  { %654 = vmatprep.subr.bf16.mxu1 %v716_v25 }
  0x46   :  { %607 = vmatpush3.bf16.msra.mxu0 %v712_v23 }
  0x47   :  { %660 = vmatprep.subr.bf16.mxu0 %v722_v28 }
  0x48   :  { %655 = vmatpush3.bf16.msra.mxu1 %v716_v25 }
  0x49   :  { %335 = vmatmul.mubr.bf16.vlgmr.msra.gmra.mxu0 %v713_v26 }
  0x4a   :  { %342 = vmatprep.mubr.bf16.mxu0 %v719_v27  ;;  %661 = vmatpush3.bf16.msra.mxu0 %v722_v28 }
  0x4b   :  { %662 = vmatprep.subr.bf16.mxu0 %v723_v29  ;;  %657 = vmatmul.mubr.bf16.vlgmr.msra.gmra.mxu1 %v718_v30 }
  0x4e   :  { %663 = vmatpush3.bf16.msra.mxu0 %v723_v29 }
  0x4f   :  { %664 = vmatprep.subr.bf16.mxu0 %v724_v32 }
  0x51   :  { %343 = vmatmul.mubr.bf16.gmra.mxu0 %v721_v31 }
  0x52   :  { %665 = vmatpush3.bf16.msra.mxu0 %v724_v32 }
  0x53   :  { %666 = vmatprep.subr.bf16.mxu0 %v725_v33 }
  0x56   :  { %667 = vmatpush3.bf16.msra.mxu0 %v725_v33 }
  0x57   :  { %668 = vmatprep.subr.bf16.mxu0 %v726_v34 }
  0x5a   :  { %669 = vmatpush3.bf16.msra.mxu0 %v726_v34 }
  0x5b   :  { %670 = vmatprep.subr.bf16.mxu0 %v727_v35 }
  0x5e   :  { %671 = vmatpush3.bf16.msra.mxu0 %v727_v35 }
  0x5f   :  { %672 = vmatprep.subr.bf16.mxu0 %v728_v36 }
  0x62   :  { %673 = vmatpush3.bf16.msra.mxu0 %v728_v36 }
  0x63   :  { %674 = vmatprep.subr.bf16.mxu0 %v729_v37 }
  0x66   :  { %675 = vmatpush3.bf16.msra.mxu0 %v729_v37 }
 0x109   :  { %v608_v38 = vpop.f32.mrf.mxu0 }
 0x10b   :  { %v609_v39 = vpop.f32.mrf.mxu0  ;;  %v658_v42 = vpop.f32.mrf.mxu1 }
 0x10c   :  { %v610_v41 = vadd.f32 %v609_v39, %v608_v38 }
 0x10d   :  { %v611_v43 = vpop.f32.mrf.mxu0  ;;  %v385_v45 = vpop.f32.mrf.mxu1 }
 0x10e   :  { %v337_v44 = vadd.f32 %v610_v41, %v552_v40 }
 0x10f   :  { %v612_v46 = vpop.f32.mrf.mxu0  ;;  %v659_v48 = vpop.f32.mrf.mxu1 }
 0x110   :  { %v613_v47 = vadd.f32 %v612_v46, %v611_v43  ;;  %v386_v50 = vadd.f32 %v385_v45, %v337_v44 }
 0x111   :  { %v614_v49 = vpop.f32.mrf.mxu0  ;;  %v388_v52 = vpop.f32.mrf.mxu1 }
 0x112   :  { %v340_v51 = vadd.f32 %v613_v47, %v552_v40  ;;  %v400_v57 = vmax.f32 %v386_v50, 0.0 }
 0x113   :  { %v615_v53 = vpop.f32.mrf.mxu0 }
 0x114   :  { %v616_v54 = vadd.f32 %v615_v53, %v614_v49  ;;  %v389_v55 = vadd.f32 %v388_v52, %v340_v51 }
 0x115   :  { %v617_v56 = vpop.f32.mrf.mxu0 }
 0x116   :  { %v345_v58 = vadd.f32 %v616_v54, %v552_v40  ;;  %v401_v59 = vmax.f32 %v389_v55, 0.0 }
 0x117   :  { %v618_v60 = vpop.f32.mrf.mxu0 }
 0x118   :  { %v404_v61 = vpack.c.bf16 %v401_v59, %v400_v57  ;;  %v619_v62 = vadd.f32 %v618_v60, %v617_v56  ;;  %v394_v63 = vadd.f32 %v658_v42, %v345_v58 }
 0x11a   :  { %v348_v0 = vadd.f32 %v619_v62, %v552_v40  ;;  %676 = vmatprep.mubr.bf16.mxu0 %v404_v61  ;;  %v402_v2 = vmax.f32 %v394_v63, 0.0 }
 0x11c   :  { %v397_v1 = vadd.f32 %v659_v48, %v348_v0 }
 0x11e   :  { %v403_v3 = vmax.f32 %v397_v1, 0.0 }
 0x120   :  { %v405_v4 = vpack.c.bf16 %v403_v3, %v402_v2 }
 0x122   :  { %677 = vmatmul.mubr.bf16.vlgmr.msra.gmra.mxu0 %v405_v4 }
 0x1e2   :  { %v678_v6 = vpop.f32.mrf.mxu0 }
 0x1e3   :  { %v520_v7 = vadd.f32 %v678_v6, %v583_v5 }
 0x1e4   :  { %v511_v8 = vpop.f32.mrf.mxu0 }
 0x1e5   :  { %730 = vtanh.f32 %v520_v7  ;;  %v512_v9 = vadd.f32 %v583_v5, %v511_v8 }
 0x1e6   :  { %v679_v10 = vpop.f32.mrf.mxu0 }
 0x1e7   :  { %732 = vtanh.f32 %v512_v9  ;;  %v523_v11 = vadd.f32 %v679_v10, %v583_v5 }
 0x1e8   :  { %v514_v12 = vpop.f32.mrf.mxu0 }
 0x1e9   :  { %734 = vtanh.f32 %v523_v11  ;;  %v515_v13 = vadd.f32 %v583_v5, %v514_v12 }
 0x1eb   :  { %736 = vtanh.f32 %v515_v13 }
 0x1f2   :  { %v731_v14 = vpop.eup %730 }
 0x1f3   :  { %532 = vst [vmem:[#allocation8 + $0x10] sm:$0xff] %v731_v14 }
 0x1f4   :  { %v733_v15 = vpop.eup %732 }
 0x1f5   :  { %530 = vst [vmem:[#allocation8] sm:$0xff] %v733_v15 }
 0x1f6   :  { %v735_v16 = vpop.eup %734 }
 0x1f7   :  { %533 = vst [vmem:[#allocation8 + $0x18] sm:$0xff] %v735_v16 }
 0x1f8   :  { %v737_v17 = vpop.eup %736 }
 0x1f9   :  { %531 = vst [vmem:[#allocation8 + $0x8] sm:$0xff] %v737_v17 }
 0x1fa   :  { %809 = shalt.err (!%p806_p5)
}
 0x1fb   :  { %s832_s14 = smov 128   ;;  %s833_s15 = smov 8  }
 0x1fc   :  { %545 = dma.vmem_to_hbm [thread:$0]  %s540_s13, 512, %s887_s5, [#allocation4], %s832_s14, %s832_s14, %s833_s15  }
 0x1fd   :  { %822 = dma.done.wait [#allocation4], 512  }
 0x1fe   :  { %823 = vsyncadd [#allocation4], 4294966784 }
 0x1ff   :  { %549 = vsyncpa [#allocation3], 1 }
 0x200   :  { %550 = vsyncpa [#allocation6], 1 }
 0x201   :  { %551 = vsyncpa [#allocation4], 1 }

</bundles_post_ra>
